<compile_context>
chip_gen: v6e
topology: v6e:2x2x1
jax: 0.10.0
libtpu: 0.0.40
codegen_flags: <defaults>
</compile_context>

<pallas_src>
import functools

import jax
import jax.numpy as jnp
from jax.experimental import pallas as pl
from jax.experimental.pallas import tpu as pltpu


def _round_up(x, m):
    return (x + m - 1) // m * m


def _cdiv(a, b):
    return -(-a // b)


def _sublane(itemsize):
    # 8 rows for 4-byte, 16 for 2-byte, 32 for 1-byte dtypes.
    return max(8, 32 // int(itemsize))


def _default_vmem_limit():
    try:
        cap = int(pltpu.get_tpu_info().vmem_capacity_bytes)
    except Exception:
        cap = 64 * 1024 * 1024
    # ~62% of physical VMEM: ~40 MiB on v7x (64 MiB/TC), ~80 MiB on v5e/v6e (128 MiB).
    return int(min(cap * 0.62, 100 * 1024 * 1024))


def lora_kernel(x_ref, a_ref, b_ref, o_ref, *, scaling):
    """out = x + ((x @ A) * scaling) @ B  (== x + (x @ A @ B) * scaling)."""
    x = x_ref[...]                                                       # (tm, D) native dtype
    xa = jnp.dot(x, a_ref[...], preferred_element_type=jnp.float32)     # (tm, R) f32 acc
    xa = (xa * scaling).astype(b_ref.dtype)                             # scale tiny intermediate
    xab = jnp.dot(xa, b_ref[...], preferred_element_type=jnp.float32)   # (tm, D) f32 acc
    # Residual add in f32 with one downcast: tighter numerics, and avoids emulated
    # bf16 VPU adds on v5e.
    o_ref[...] = (x.astype(jnp.float32) + xab).astype(o_ref.dtype)


def _choose_tm(m_rows, d, r_pad, x_itemsize, w_itemsize, vmem_limit_bytes):
    """Largest row tile that fits VMEM, with a deep/even grid for big problems."""
    row_align = _sublane(x_itemsize)
    budget = int(vmem_limit_bytes * 0.7)          # headroom for compiler scratch
    fixed = 2 * d * r_pad * w_itemsize            # A + B, single-buffered residents
    # 2x double-buffered x + 2x double-buffered out + f32 xa + ~half of fused f32 xab.
    per_row = 4 * d * x_itemsize + 4 * r_pad + 2 * d
    tm = (budget - fixed) // max(per_row, 1)
    tm = int(max(row_align, min(tm, 1024, m_rows)))
    tm -= tm % row_align
    tm = max(tm, row_align)

    # Large problems: keep >=8 grid steps and an even count so v7x's two
    # TensorCores split the "parallel" axis evenly and the DMA pipeline stays deep.
    if m_rows >= 8 * 128:
        steps = _cdiv(m_rows, tm)
        target = max(8, steps + (steps % 2))
        if target != steps:
            tm = max(row_align, _round_up(_cdiv(m_rows, target), row_align))
    return tm


def lora_adapter(x, lora_A, lora_B, *, alpha=1.0, tm=None, vmem_limit_bytes=None):
    """x: (..., dim). Applies LoRA adapter: x + (x @ A @ B) * alpha / rank."""
    dim, rank = lora_A.shape
    assert lora_B.shape == (rank, dim)
    scaling = float(alpha) / float(rank)

    if vmem_limit_bytes is None:
        vmem_limit_bytes = _default_vmem_limit()

    orig_shape = x.shape
    x2d = x.reshape(-1, dim)
    m = x2d.shape[0]

    x_itemsize = jnp.dtype(x2d.dtype).itemsize
    w_itemsize = jnp.dtype(lora_A.dtype).itemsize

    # Pad rank only to the weight dtype's sublane multiple (B's rank axis is a
    # sublane axis). Padded A cols / B rows are zero, so the math is unchanged.
    r_pad = _round_up(rank, _sublane(w_itemsize))
    if r_pad != rank:
        lora_A = jnp.pad(lora_A, ((0, 0), (0, r_pad - rank)))
        lora_B = jnp.pad(lora_B, ((0, r_pad - rank), (0, 0)))

    # Pad rows only to the sublane multiple (cheap); the ragged tail tile is
    # handled by Pallas' masked boundary block, not an extra full copy of x.
    row_align = _sublane(x_itemsize)
    m_pad = _round_up(max(m, 1), row_align)
    if m_pad != m:
        x2d = jnp.pad(x2d, ((0, m_pad - m), (0, 0)))

    if tm is None:
        tm = _choose_tm(m_pad, dim, r_pad, x_itemsize, w_itemsize, vmem_limit_bytes)

    grid = (_cdiv(m_pad, tm),)

    def const_spec(shape):
        # Constant-index weight block: fetched once; one VMEM buffer is enough.
        try:
            return pl.BlockSpec(shape, lambda i: (0, 0), pipeline_mode=pl.Buffered(1))
        except (TypeError, AttributeError):
            return pl.BlockSpec(shape, lambda i: (0, 0))

    cost = pl.CostEstimate(
        flops=4 * m_pad * dim * r_pad,
        transcendentals=0,
        bytes_accessed=2 * m_pad * dim * x_itemsize + 2 * dim * r_pad * w_itemsize,
    )

    out2d = pl.pallas_call(
        functools.partial(lora_kernel, scaling=scaling),
        out_shape=jax.ShapeDtypeStruct((m_pad, dim), x.dtype),
        grid_spec=pltpu.PrefetchScalarGridSpec(
            num_scalar_prefetch=0,
            grid=grid,
            in_specs=[
                pl.BlockSpec((tm, dim), lambda i: (i, 0)),   # x row tile (streamed)
                const_spec((dim, r_pad)),                    # A (resident, single buffer)
                const_spec((r_pad, dim)),                    # B (resident, single buffer)
            ],
            out_specs=pl.BlockSpec((tm, dim), lambda i: (i, 0)),
        ),
        compiler_params=pltpu.CompilerParams(
            dimension_semantics=("parallel",),
            vmem_limit_bytes=int(vmem_limit_bytes)),
        cost_estimate=cost,
    )(x2d, lora_A, lora_B)

    if m_pad != m:
        out2d = out2d[:m]
    return out2d.reshape(orig_shape)
    # TODO(synk): for HBM-bound deployments, stream x/out as bf16 at the call
    # boundary (keep f32 MXU accumulation) for a near-2x wall-clock win.


if __name__ == "__main__":
    # Small shapes consistent with the module: (batch, seq, dim).
    batch, seq, dim, rank, alpha = 2, 8, 32, 16, 1.0

    key = jax.random.PRNGKey(0)
    kx, ka, kb = jax.random.split(key, 3)

    x = jax.random.normal(kx, (batch, seq, dim), dtype=jnp.float32)

    # Module __init__: lora_A = randn(dim, rank) * 0.01, lora_B = zeros(rank, dim).
    # Use a nonzero B as well so the numerics check exercises the low-rank path.
    lora_A = jax.random.normal(ka, (dim, rank), dtype=jnp.float32) * 0.01
    lora_B = jax.random.normal(kb, (rank, dim), dtype=jnp.float32) * 0.1

    out = lora_adapter(x, lora_A, lora_B, alpha=alpha)
    out = jax.block_until_ready(out)

    ref = x + (x @ lora_A @ lora_B) * (alpha / rank)
    assert out.shape == x.shape
    assert jnp.allclose(out, ref, atol=1e-4, rtol=1e-4), \
        float(jnp.max(jnp.abs(out - ref)))

    # Exact module-__init__ case (lora_B == 0 -> identity).
    out0 = lora_adapter(x, lora_A, jnp.zeros((rank, dim), jnp.float32), alpha=alpha)
    out0 = jax.block_until_ready(out0)
    assert jnp.allclose(out0, x, atol=1e-6)

    # Row count that does not divide the sublane / tile (exercises the ragged tail).
    x_odd = jax.random.normal(kx, (3, 5, dim), dtype=jnp.float32)
    out_odd = jax.block_until_ready(lora_adapter(x_odd, lora_A, lora_B, alpha=alpha))
    ref_odd = x_odd + (x_odd @ lora_A @ lora_B) * (alpha / rank)
    assert out_odd.shape == x_odd.shape
    assert jnp.allclose(out_odd, ref_odd, atol=1e-4, rtol=1e-4)

    print("KERNEL_OK")
</pallas_src>

<mosaic_0001>
module attributes {stable_mosaic.version = 11 : i64} {
  func.func @lora_kernel(%arg0: i32, %arg1: memref<16x32xf32, #tpu.memory_space<vmem>>, %arg2: memref<32x16xf32, #tpu.memory_space<vmem>>, %arg3: memref<16x32xf32, #tpu.memory_space<vmem>>, %arg4: memref<16x32xf32, #tpu.memory_space<vmem>>) attributes {dimension_semantics = [#tpu.dimension_semantics<parallel>], iteration_bounds = array<i64: 1>, scalar_prefetch = 0 : i64, scratch_operands = 0 : i64, tpu.core_type = #tpu.core_type<tc>, window_params = [{transform_indices = @transform_0, window_bounds = array<i64: 16, 32>}, {pipeline_mode = #tpu.pipeline_mode<synchronous>, transform_indices = @transform_1, window_bounds = array<i64: 32, 16>}, {pipeline_mode = #tpu.pipeline_mode<synchronous>, transform_indices = @transform_2, window_bounds = array<i64: 16, 32>}, {transform_indices = @transform_3, window_bounds = array<i64: 16, 32>}]} {
    %c0 = arith.constant 0 : index
    %c0_0 = arith.constant 0 : index
    %0 = vector.load %arg1[%c0, %c0_0] : memref<16x32xf32, #tpu.memory_space<vmem>>, vector<16x32xf32>
    %c0_1 = arith.constant 0 : index
    %c0_2 = arith.constant 0 : index
    %1 = vector.load %arg2[%c0_1, %c0_2] : memref<32x16xf32, #tpu.memory_space<vmem>>, vector<32x16xf32>
    %cst = arith.constant dense<0.000000e+00> : vector<16x16xf32>
    %2 = tpu.matmul %0, %1, %cst {dimension_numbers = #tpu.dot_dimension_numbers<[1], [0], [0], [1], [0, 0, 1, 1], [], []>} : vector<16x32xf32>, vector<32x16xf32>, vector<16x16xf32> -> vector<16x16xf32>
    %cst_3 = arith.constant 6.250000e-02 : f32
    %3 = vector.broadcast %cst_3 : f32 to vector<16x16xf32>
    %4 = arith.mulf %2, %3 : vector<16x16xf32>
    %c0_4 = arith.constant 0 : index
    %c0_5 = arith.constant 0 : index
    %5 = vector.load %arg3[%c0_4, %c0_5] : memref<16x32xf32, #tpu.memory_space<vmem>>, vector<16x32xf32>
    %cst_6 = arith.constant dense<0.000000e+00> : vector<16x32xf32>
    %6 = tpu.matmul %4, %5, %cst_6 {dimension_numbers = #tpu.dot_dimension_numbers<[1], [0], [0], [1], [0, 0, 1, 1], [], []>} : vector<16x16xf32>, vector<16x32xf32>, vector<16x32xf32> -> vector<16x32xf32>
    %7 = arith.addf %0, %6 : vector<16x32xf32>
    %c0_7 = arith.constant 0 : index
    %c0_8 = arith.constant 0 : index
    %8 = vector.load %arg4[%c0_7, %c0_8] : memref<16x32xf32, #tpu.memory_space<vmem>>, vector<16x32xf32>
    tpu.vector_store %arg4[%c0_7, %c0_8], %7 {strides = array<i32>} : memref<16x32xf32, #tpu.memory_space<vmem>>, vector<16x32xf32>,
    return
  }
  func.func @transform_0(%arg0: i32) -> (i32, i32) {
    %c0_i32 = arith.constant 0 : i32
    %c0_i32_0 = arith.constant 0 : i32
    return %arg0, %c0_i32 : i32, i32
  }
  func.func @transform_1(%arg0: i32) -> (i32, i32) {
    %c0_i32 = arith.constant 0 : i32
    %c0_i32_0 = arith.constant 0 : i32
    %c0_i32_1 = arith.constant 0 : i32
    return %c0_i32, %c0_i32_0 : i32, i32
  }
  func.func @transform_2(%arg0: i32) -> (i32, i32) {
    %c0_i32 = arith.constant 0 : i32
    %c0_i32_0 = arith.constant 0 : i32
    %c0_i32_1 = arith.constant 0 : i32
    return %c0_i32, %c0_i32_0 : i32, i32
  }
  func.func @transform_3(%arg0: i32) -> (i32, i32) {
    %c0_i32 = arith.constant 0 : i32
    %c0_i32_0 = arith.constant 0 : i32
    return %arg0, %c0_i32 : i32, i32
  }
}

</mosaic_0001>

<bundles_post_ra>
// kernel: tpu_custom_call.1
= control target key start
LH: loop header
LB: loop body
LE: loop exit
PB: predicated region body
PF: predicated region fallthrough
CT: control target
= control target key end

     0   :  { %vm21_vm0 = vcmask 261120   ;;  %s320_s0 = inlined_call_operand.vmem [shape: f32[16,32], index: 0, kind: input, shape index: {}]   ;;  %s321_s1 = inlined_call_operand.vmem [shape: f32[32,16], index: 1, kind: input, shape index: {}]   ;;  %s322_s2 = inlined_call_operand.vmem [shape: f32[16,32], index: 2, kind: input, shape index: {}]   ;;  %s323_s3 = inlined_call_operand.hbm [shape: f32[16,32], index: 3, kind: output, shape index: {}]  }
   0x1   :  { %v20_v0 = vld [vmem:[%s321_s1 + $0x18] sm:$0xff]  ;;  %v19_v1 = vld [vmem:[%s321_s1 + $0x10] sm:$0xff]  ;;  %v15_v2 = vld [vmem:[%s320_s0] sm:$0xff] }
   0x2   :  { %223 = vmatprep.subr.mxu0 %v20_v0  ;;  %v18_v3 = vld [vmem:[%s321_s1 + $0x8] sm:$0xff]  ;;  %231 = vmatprep.mubr.msk.f32.mxu0 %vm21_vm0, %v15_v2 }
   0x3   :  { %224 = vmatpush3.msra.mxu0 %v20_v0 }
   0x4   :  { %8 = vsyncpa [#allocation3], 0  ;;  %225 = vmatprep.subr.mxu0 %v19_v1  ;;  %v17_v4 = vld [vmem:[%s321_s1] sm:$0xff]  ;;  %v16_v5 = vld [vmem:[%s320_s0 + $0x8] sm:$0xff]  ;;  %vm107_vm1 = vcmask 130048   ;;  %s266_s0 = smov [#allocation2]  }
   0x5   :  { %226 = vmatpush3.msra.mxu0 %v19_v1  ;;  %v106_v6 = vld [vmem:[%s322_s2 + $0x8] sm:$0xff]  ;;  %v105_v7 = vld [vmem:[%s322_s2] sm:$0xff]  ;;  %s198_s1 = sshll.u32 %s266_s0, 4  ;;  %s199_s1 = int_to_ptr.vmem [resolvable:$true] %s198_s1 }
   0x6   :  { %227 = vmatprep.subr.mxu0 %v18_v3  ;;  %234 = vmatprep.subr.mxu1 %v106_v6  ;;  %s244_s2 = scalar_lea.vmem %s199_s1, 256  ;;  %p249_p1 = scmp.lt.s32.totalorder %s199_s1, %s199_s1 }
   0x7   :  { %228 = vmatpush3.msra.mxu0 %v18_v3  ;;  %235 = vmatpush3.msra.mxu1 %v106_v6  ;;  %p245_p0 = scmp.ne.s32.totalorder %s199_s1, %s244_s2  ;;  %p250_p2 = scmp.lt.s32.totalorder %s244_s2, %s244_s2 }
   0x8   :  { %229 = vmatprep.subr.mxu0 %v17_v4  ;;  %236 = vmatprep.subr.mxu1 %v105_v7 }
   0x9   :  { %230 = vmatpush3.msra.mxu0 %v17_v4  ;;  %237 = vmatpush3.msra.mxu1 %v105_v7  ;;  %p251_p3 = por %p250_p2, %p249_p1 }
   0xa   :  { %232 = vmatmul.mubr.msk.f32.vlgmr.msra.gmra.mxu0 %vm21_vm0, %v16_v5 }
   0xb   :  { %p252_p4 = pnand %p251_p3, %p245_p0 }
  0xca   :  { %v233_v8 = vpop.f32.mrf.mxu0 }
  0xcb   :  { %v104_v11 = vmul.f32 0.0625, %v233_v8 }
  0xcc   :  { %v94_v9 = vpop.f32.mrf.mxu0 }
  0xcd   :  { %v103_v10 = vmul.f32 0.0625, %v94_v9 }
  0xcf   :  { %238 = vmatprep.mubr.msk.f32.mxu1 %vm107_vm1, %v103_v10 }
  0xd0   :  { %239 = vmatmul.mubr.msk.f32.vlgmr.msra.gmra.mxu1 %vm107_vm1, %v104_v11 }
 0x190   :  { %v240_v12 = vpop.f32.mrf.mxu1 }
 0x191   :  { %v190_v13 = vadd.f32 %v240_v12, %v16_v5 }
 0x192   :  { %v180_v14 = vpop.f32.mrf.mxu1 }
 0x193   :  { %192 = vst.msk [vmem:[#allocation2 + $0x8] sm:$0xff] %vm21_vm0, %v190_v13  ;;  %v189_v15 = vadd.f32 %v180_v14, %v15_v2 }
 0x195   :  { %191 = vst.msk [vmem:[#allocation2] sm:$0xff] %vm21_vm0, %v189_v15 }
 0x196   :  { %255 = shalt.err (!%p252_p4)
}
 0x197   :  { %s267_s28 = smov 128   ;;  %s268_s29 = smov 8  }
 0x198   :  { %204 = dma.vmem_to_hbm [thread:$0]  %s199_s1, 256, %s323_s3, [#allocation3], %s267_s28, %s267_s28, %s268_s29  }
 0x199   :  { %264 = dma.done.wait [#allocation3], 256  }
 0x19a   :  { %265 = vsyncadd [#allocation3], 4294967040 }
 0x19b   :  { %208 = vsyncpa [#allocation3], 1 }

</bundles_post_ra>
